<compile_context>
chip_gen: v7x
topology: tpu7x:2x2x1
jax: 0.10.0
libtpu: 0.0.40
codegen_flags: <defaults>
</compile_context>

<pallas_src>
import functools

import jax
import jax.numpy as jnp
from jax.experimental import pallas as pl
from jax.experimental.pallas import tpu as pltpu

RMS_EPS = 1e-6


def _round_up(x: int, m: int) -> int:
    return (x + m - 1) // m * m


def _cdiv(a: int, b: int) -> int:
    return (a + b - 1) // b


def _vmem_capacity_bytes() -> int:
    """Physical VMEM of the attached TPU; conservative 64 MiB fallback (v7x)."""
    try:
        cap = getattr(pltpu.get_tpu_info(), "vmem_capacity_bytes", None)
        if cap:
            return int(cap)
    except Exception:
        pass
    return 64 * 1024 * 1024


def _spec(block_shape, index_map, *, buffers=None):
    """BlockSpec helper: request an explicit buffer count (e.g. 1 for
    constant-index VMEM-resident operands) when this jax supports it."""
    if buffers is not None and hasattr(pl, "Buffered"):
        try:
            return pl.BlockSpec(block_shape, index_map,
                                pipeline_mode=pl.Buffered(buffers))
        except TypeError:   # older jax without pipeline_mode on BlockSpec
            pass
    return pl.BlockSpec(block_shape, index_map)


def _projector_kernel(x_ref, w1_ref, w2_ref, wpost_ref, o_ref, acc, ssq,
                      *, din, hh, eps):
    # Grid: (row tiles [parallel], Din reduction tiles [arbitrary]).
    # x_ref:     (TM, TK)  raw stacked audio rows (original dtype)
    # w1_ref:    (TK, H)   bf16, ln_pre scale folded in (a|gate merged)
    # w2_ref:    (H/2, H)  bf16 linear_2 weight (in, out), VMEM-resident
    # wpost_ref: (1, H)    f32 ln_post scale, VMEM-resident
    # o_ref:     (TM, H)
    # acc:       (TM, H)   f32 accumulator; ssq: (TM, 1) f32 sum of squares
    k = pl.program_id(1)

    @pl.when(k == 0)
    def _init():
        acc[...] = jnp.zeros_like(acc)
        ssq[...] = jnp.zeros_like(ssq)

    # Load the x tile once; derive the f32 (stats) and bf16 (MXU) views from it.
    xr = x_ref[...]
    xf = xr.astype(jnp.float32)
    ssq[...] += jnp.sum(xf * xf, axis=-1, keepdims=True)
    xm = xr if xr.dtype == jnp.bfloat16 else xf.astype(jnp.bfloat16)

    # linear_1 on the MXU (bf16 in, f32 accumulate).  The pre-norm row scale
    # rsqrt(mean(x^2)+eps) commutes with the matmul and is applied once after
    # the Din reduction; ln_pre's per-feature weight is folded into w1.
    acc[...] += jnp.dot(xm, w1_ref[...], preferred_element_type=jnp.float32)

    @pl.when(k == pl.num_programs(1) - 1)
    def _finalize():
        inv = jax.lax.rsqrt(ssq[...] * (1.0 / din) + eps)       # (TM, 1)
        h = acc[...] * inv                                       # (TM, H)
        a = h[:, :hh]                                            # lane-aligned
        g = h[:, hh:]
        act = (g * jax.nn.sigmoid(g)) * a                        # SwiGLU

        h2 = jnp.dot(act.astype(jnp.bfloat16), w2_ref[...],
                     preferred_element_type=jnp.float32)         # linear_2

        var2 = jnp.mean(h2 * h2, axis=-1, keepdims=True)         # RMSNorm(post)
        h2n = h2 * jax.lax.rsqrt(var2 + eps)
        o_ref[...] = (wpost_ref[...] * h2n).astype(o_ref.dtype)


def _plan_tiles(M, Din, H, x_bytes, o_bytes, vmem_cap):
    """Return (TM, TK, w1_buffers).  w1_buffers == 1 <=> w1 fully VMEM-resident
    (no Din reduction axis re-streaming)."""
    Hh = H // 2
    budget = int(vmem_cap * 0.70)        # leave slack for compiler temporaries
    row_mult = 16 if x_bytes == 2 else 8
    fixed = Hh * H * 2 + 8 * H * 4       # w2 (bf16, single-buffered) + ln_post

    def need(tm, tk, w1_buffers):
        return (fixed
                + w1_buffers * tk * H * 2          # w1 tiles in flight (bf16)
                + 2 * tm * tk * x_bytes            # x tile (double-buffered)
                + 2 * tm * H * o_bytes             # out tile (double-buffered)
                + tm * H * 4 + tm * 32             # f32 accumulator + ssq
                + 3 * tm * H * 4)                  # finalize temporaries

    tm_cands = [t for t in (1024, 512, 256, 128, 64, 32, 16, 8) if t >= row_mult]
    mp_min = _round_up(M, row_mult)

    # 1) Fully resident w1 (single-buffered): eliminates all weight re-streaming
    #    across row tiles.  Cap TM so there are >=2 row tiles (v7x has 2 TCs and
    #    extra row tiles cost no extra weight HBM traffic when w1 is resident).
    for tm in tm_cands:
        if need(tm, Din, 1) <= budget:
            tm_split = max(row_mult, _round_up(_cdiv(M, 2), row_mult))
            return min(tm, tm_split, mp_min), Din, 1

    # 2) Din-tiled w1 (double-buffered): weight HBM traffic scales with Mp/TM,
    #    so maximise TM first, then take the largest TK that still fits.
    for tm in tm_cands:
        tm_eff = min(tm, mp_min)
        for tk in (1024, 512, 256):
            if tk >= Din:
                continue
            if need(tm_eff, tk, 2) <= budget:
                return tm_eff, tk, 2

    # Last resort: smallest row tile; tile Din only if it is large.
    if Din > 256:
        return row_mult, 256, 2
    return row_mult, Din, 1


def _pad_and_stack(audio_embeds: jax.Array, stack_factor: int) -> jax.Array:
    """Matches ProjectionLayer._pad_and_stack: always pads by
    (stack_factor - T % stack_factor), even when T is already a multiple."""
    B, T, C = audio_embeds.shape
    pad = stack_factor - T % stack_factor
    audio_embeds = jnp.pad(audio_embeds, ((0, 0), (0, pad), (0, 0)))
    Tp = T + pad
    return audio_embeds.reshape(B, Tp // stack_factor, C * stack_factor)


@functools.partial(jax.jit, static_argnames=("stack_factor",))
def gazelle_projector(audio_features, w_ln_pre, w1_t, w2_t, w_ln_post,
                      *, stack_factor: int = 8):
    # Glue: pad + stack (pure pad/reshape), flatten batch & time into rows.
    stacked = _pad_and_stack(audio_features, stack_factor)          # (B, Ts, Din)
    B, Ts, Din = stacked.shape
    H = w1_t.shape[1]
    Hh = H // 2
    M = B * Ts
    x2d = stacked.reshape(M, Din)

    # ---- parameter prep (outside the kernel) ----
    # Fold ln_pre per-feature scale into linear_1; MXU weights in bf16.
    w1 = (w_ln_pre.reshape(-1, 1).astype(jnp.float32)
          * w1_t.astype(jnp.float32)).astype(jnp.bfloat16)          # (Din, H)
    w2b = w2_t.astype(jnp.bfloat16)                                  # (Hh, H)
    wpost = w_ln_post.reshape(1, -1).astype(jnp.float32)             # (1, H)

    # ---- tiling (driven by the actual chip's VMEM capacity) ----
    x_bytes = jnp.dtype(x2d.dtype).itemsize
    o_bytes = jnp.dtype(audio_features.dtype).itemsize
    vmem_cap = _vmem_capacity_bytes()
    TM, TK, w1_buffers = _plan_tiles(M, Din, H, x_bytes, o_bytes, vmem_cap)

    Mp = _round_up(M, TM)
    Dinp = Din if TK == Din else _round_up(Din, TK)

    if Mp != M:
        x2d = jnp.pad(x2d, ((0, Mp - M), (0, 0)))
    if Dinp != Din:
        x2d = jnp.pad(x2d, ((0, 0), (0, Dinp - Din)))
        w1 = jnp.pad(w1, ((0, Dinp - Din), (0, 0)))

    grid_m = Mp // TM
    grid_k = Dinp // TK

    # Honest memory cost: w1 is re-streamed once per row tile when Din is tiled.
    w1_reads = 1 if w1_buffers == 1 else grid_m
    cost = pl.CostEstimate(
        flops=2 * M * Din * H + 2 * M * Hh * H,
        transcendentals=M * Hh + 2 * M,
        bytes_accessed=(Mp * Dinp * x_bytes + w1_reads * Dinp * H * 2
                        + Hh * H * 2 + H * 4 + Mp * H * o_bytes),
    )

    kernel = functools.partial(_projector_kernel, din=Din, hh=Hh, eps=RMS_EPS)

    out2d = pl.pallas_call(
        kernel,
        out_shape=jax.ShapeDtypeStruct((Mp, H), audio_features.dtype),
        grid=(grid_m, grid_k),
        in_specs=[
            pl.BlockSpec((TM, TK), lambda m, k: (m, k)),                # x rows
            _spec((TK, H), lambda m, k: (k, 0),
                  buffers=1 if w1_buffers == 1 else None),              # w1
            _spec((Hh, H), lambda m, k: (0, 0), buffers=1),             # w2
            _spec((1, H), lambda m, k: (0, 0), buffers=1),              # ln_post
        ],
        out_specs=pl.BlockSpec((TM, H), lambda m, k: (m, 0)),
        scratch_shapes=[
            pltpu.VMEM((TM, H), jnp.float32),   # merged linear_1 accumulator
            pltpu.VMEM((TM, 1), jnp.float32),   # ln_pre sum of squares
        ],
        compiler_params=pltpu.CompilerParams(
            dimension_semantics=("parallel", "arbitrary"),
            vmem_limit_bytes=int(min(vmem_cap * 0.9, vmem_cap - (2 << 20))),
        ),
        cost_estimate=cost,
    )(x2d, w1, w2b, wpost)

    return out2d[:M].reshape(B, Ts, H)


def reference_jax(audio_features, w_ln_pre, w1_t, w2_t, w_ln_post,
                  stack_factor=8):
    """Pure-JAX f32 reference mirroring the PyTorch forward exactly."""
    x = _pad_and_stack(audio_features, stack_factor).astype(jnp.float32)
    var = jnp.mean(x * x, axis=-1, keepdims=True)
    x = w_ln_pre.reshape(-1) * (x * jax.lax.rsqrt(var + RMS_EPS))
    h = x @ w1_t.astype(jnp.float32)
    H = h.shape[-1]
    a, gate = h[..., : H // 2], h[..., H // 2:]
    act = jax.nn.silu(gate) * a
    h2 = act @ w2_t.astype(jnp.float32)
    var2 = jnp.mean(h2 * h2, axis=-1, keepdims=True)
    return w_ln_post.reshape(-1) * (h2 * jax.lax.rsqrt(var2 + RMS_EPS))


if __name__ == "__main__":
    # Small, module-consistent shapes (lane-dense: Din, H, H/2 multiples of 128):
    #   audio_config.hidden_size = 16, stack_factor = 8 -> Din = 128
    #   config.hidden_size (LLM hidden) = 256 -> SwiGLU intermediate = 128
    B, T, C = 2, 13, 16
    stack_factor = 8
    hidden_dim = 256
    Din = C * stack_factor

    key = jax.random.PRNGKey(0)
    k_x, k_w1, k_w2 = jax.random.split(key, 3)

    audio_features = jax.random.normal(k_x, (B, T, C), dtype=jnp.float32)

    # RMSNorm weights init to 0.4 (as in the module); Linear weights random,
    # pre-transposed to (in, out) so y = x @ W_t  ==  x @ W^T in PyTorch.
    w_ln_pre = jnp.full((Din,), 0.4, dtype=jnp.float32)
    w_ln_post = jnp.full((hidden_dim,), 0.4, dtype=jnp.float32)
    w1_t = (jax.random.normal(k_w1, (Din, hidden_dim), dtype=jnp.float32)
            * (1.0 / jnp.sqrt(Din)))
    w2_t = (jax.random.normal(k_w2, (hidden_dim // 2, hidden_dim),
                              dtype=jnp.float32)
            * (1.0 / jnp.sqrt(hidden_dim // 2)))

    out = gazelle_projector(audio_features, w_ln_pre, w1_t, w2_t, w_ln_post,
                            stack_factor=stack_factor)
    out = jax.block_until_ready(out)

    ref = reference_jax(audio_features, w_ln_pre, w1_t, w2_t, w_ln_post,
                        stack_factor=stack_factor)

    Ts = (T + (stack_factor - T % stack_factor)) // stack_factor
    assert out.shape == (B, Ts, hidden_dim), out.shape
    # Matmuls run in bf16 on the MXU (f32 accumulation), so compare against the
    # f32 reference with a bf16-appropriate tolerance.
    max_err = float(jnp.max(jnp.abs(out.astype(jnp.float32) - ref)))
    assert jnp.allclose(out.astype(jnp.float32), ref, atol=5e-2, rtol=5e-2), (
        f"mismatch vs reference, max abs err = {max_err}")
    print("KERNEL_OK")
</pallas_src>

<mosaic_0001>
module attributes {stable_mosaic.version = 11 : i64} {
  func.func @_projector_kernel(%arg0: i32, %arg1: i32, %arg2: memref<8x128xf32, #tpu.memory_space<vmem>>, %arg3: memref<128x256xbf16, #tpu.memory_space<vmem>>, %arg4: memref<128x256xbf16, #tpu.memory_space<vmem>>, %arg5: memref<1x256xf32, #tpu.memory_space<vmem>>, %arg6: memref<8x256xf32, #tpu.memory_space<vmem>>, %arg7: memref<8x256xf32, #tpu.memory_space<vmem>>, %arg8: memref<8x1xf32, #tpu.memory_space<vmem>>) attributes {dimension_semantics = [#tpu.dimension_semantics<parallel>, #tpu.dimension_semantics<arbitrary>], iteration_bounds = array<i64: 1, 1>, scalar_prefetch = 0 : i64, scratch_operands = 2 : i64, tpu.core_type = #tpu.core_type<tc>, window_params = [{transform_indices = @transform_0, window_bounds = array<i64: 8, 128>}, {pipeline_mode = #tpu.pipeline_mode<synchronous>, transform_indices = @transform_1, window_bounds = array<i64: 128, 256>}, {pipeline_mode = #tpu.pipeline_mode<synchronous>, transform_indices = @transform_2, window_bounds = array<i64: 128, 256>}, {pipeline_mode = #tpu.pipeline_mode<synchronous>, transform_indices = @transform_3, window_bounds = array<i64: 1, 256>}, {transform_indices = @transform_4, window_bounds = array<i64: 8, 256>}]} {
    %c0_i32 = arith.constant 0 : i32
    %0 = arith.cmpi eq, %arg1, %c0_i32 : i32
    %1 = arith.extui %0 : i1 to i32
    %c0_i32_0 = arith.constant 0 : i32
    %2 = arith.cmpi ne, %1, %c0_i32_0 : i32
    scf.if %2 {
      %cst_15 = arith.constant 0.000000e+00 : f32
      %19 = vector.broadcast %cst_15 : f32 to vector<8x256xf32>
      %c0_16 = arith.constant 0 : index
      %c0_17 = arith.constant 0 : index
      %20 = vector.load %arg7[%c0_16, %c0_17] : memref<8x256xf32, #tpu.memory_space<vmem>>, vector<8x256xf32>
      tpu.vector_store %arg7[%c0_16, %c0_17], %19 {strides = array<i32>} : memref<8x256xf32, #tpu.memory_space<vmem>>, vector<8x256xf32>,
      %cst_18 = arith.constant 0.000000e+00 : f32
      %21 = vector.broadcast %cst_18 : f32 to vector<8x1xf32>
      %c0_19 = arith.constant 0 : index
      %c0_20 = arith.constant 0 : index
      %22 = vector.load %arg8[%c0_19, %c0_20] : memref<8x1xf32, #tpu.memory_space<vmem>>, vector<8x1xf32>
      tpu.vector_store %arg8[%c0_19, %c0_20], %21 {strides = array<i32>} : memref<8x1xf32, #tpu.memory_space<vmem>>, vector<8x1xf32>,
    } else {
    }
    %c0 = arith.constant 0 : index
    %c0_1 = arith.constant 0 : index
    %3 = vector.load %arg2[%c0, %c0_1] : memref<8x128xf32, #tpu.memory_space<vmem>>, vector<8x128xf32>
    %c0_2 = arith.constant 0 : index
    %c0_3 = arith.constant 0 : index
    %4 = vector.load %arg8[%c0_2, %c0_3] : memref<8x1xf32, #tpu.memory_space<vmem>>, vector<8x1xf32>
    %5 = arith.mulf %3, %3 : vector<8x128xf32>
    %cst = arith.constant dense<0.000000e+00> : vector<8xf32>
    %6 = vector.multi_reduction <add>, %5, %cst [1] : vector<8x128xf32> to vector<8xf32>
    %7 = vector.shape_cast %6 : vector<8xf32> to vector<8x1xf32>
    %8 = arith.addf %4, %7 : vector<8x1xf32>
    %c0_4 = arith.constant 0 : index
    %c0_5 = arith.constant 0 : index
    %9 = vector.load %arg8[%c0_4, %c0_5] : memref<8x1xf32, #tpu.memory_space<vmem>>, vector<8x1xf32>
    tpu.vector_store %arg8[%c0_4, %c0_5], %8 {strides = array<i32>} : memref<8x1xf32, #tpu.memory_space<vmem>>, vector<8x1xf32>,
    %10 = arith.truncf %3 : vector<8x128xf32> to vector<8x128xbf16>
    %c0_6 = arith.constant 0 : index
    %c0_7 = arith.constant 0 : index
    %11 = vector.load %arg7[%c0_6, %c0_7] : memref<8x256xf32, #tpu.memory_space<vmem>>, vector<8x256xf32>
    %c0_8 = arith.constant 0 : index
    %c0_9 = arith.constant 0 : index
    %12 = vector.load %arg3[%c0_8, %c0_9] : memref<128x256xbf16, #tpu.memory_space<vmem>>, vector<128x256xbf16>
    %cst_10 = arith.constant dense<0.000000e+00> : vector<8x256xf32>
    %13 = tpu.matmul %10, %12, %cst_10 {dimension_numbers = #tpu.dot_dimension_numbers<[1], [0], [0], [1], [0, 0, 1, 1], [], []>} : vector<8x128xbf16>, vector<128x256xbf16>, vector<8x256xf32> -> vector<8x256xf32>
    %14 = arith.addf %11, %13 : vector<8x256xf32>
    %c0_11 = arith.constant 0 : index
    %c0_12 = arith.constant 0 : index
    %15 = vector.load %arg7[%c0_11, %c0_12] : memref<8x256xf32, #tpu.memory_space<vmem>>, vector<8x256xf32>
    tpu.vector_store %arg7[%c0_11, %c0_12], %14 {strides = array<i32>} : memref<8x256xf32, #tpu.memory_space<vmem>>, vector<8x256xf32>,
    %c0_i32_13 = arith.constant 0 : i32
    %16 = arith.cmpi eq, %arg1, %c0_i32_13 : i32
    %17 = arith.extui %16 : i1 to i32
    %c0_i32_14 = arith.constant 0 : i32
    %18 = arith.cmpi ne, %17, %c0_i32_14 : i32
    scf.if %18 {
      %c0_15 = arith.constant 0 : index
      %c0_16 = arith.constant 0 : index
      %19 = vector.load %arg8[%c0_15, %c0_16] : memref<8x1xf32, #tpu.memory_space<vmem>>, vector<8x1xf32>
      %cst_17 = arith.constant 7.812500e-03 : f32
      %20 = vector.broadcast %cst_17 : f32 to vector<8x1xf32>
      %21 = arith.mulf %19, %20 : vector<8x1xf32>
      %cst_18 = arith.constant 9.99999997E-7 : f32
      %22 = vector.broadcast %cst_18 : f32 to vector<8x1xf32>
      %23 = arith.addf %21, %22 : vector<8x1xf32>
      %24 = math.rsqrt %23 : vector<8x1xf32>
      %c0_19 = arith.constant 0 : index
      %c0_20 = arith.constant 0 : index
      %25 = vector.load %arg7[%c0_19, %c0_20] : memref<8x256xf32, #tpu.memory_space<vmem>>, vector<8x256xf32>
      %26 = vector.broadcast %24 : vector<8x1xf32> to vector<8x256xf32>
      %27 = arith.mulf %25, %26 : vector<8x256xf32>
      %28 = vector.extract_strided_slice %27 {offsets = [0, 0], sizes = [8, 128], strides = [1, 1]} : vector<8x256xf32> to vector<8x128xf32>
      %29 = vector.extract_strided_slice %27 {offsets = [0, 128], sizes = [8, 128], strides = [1, 1]} : vector<8x256xf32> to vector<8x128xf32>
      %30 = arith.negf %29 : vector<8x128xf32>
      %31 = math.exp %30 : vector<8x128xf32>
      %cst_21 = arith.constant 1.000000e+00 : f32
      %32 = vector.broadcast %cst_21 : f32 to vector<8x128xf32>
      %33 = arith.addf %32, %31 : vector<8x128xf32>
      %34 = arith.divf %32, %33 : vector<8x128xf32>
      %35 = arith.mulf %29, %34 : vector<8x128xf32>
      %36 = arith.mulf %35, %28 : vector<8x128xf32>
      %37 = arith.truncf %36 : vector<8x128xf32> to vector<8x128xbf16>
      %c0_22 = arith.constant 0 : index
      %c0_23 = arith.constant 0 : index
      %38 = vector.load %arg4[%c0_22, %c0_23] : memref<128x256xbf16, #tpu.memory_space<vmem>>, vector<128x256xbf16>
      %cst_24 = arith.constant dense<0.000000e+00> : vector<8x256xf32>
      %39 = tpu.matmul %37, %38, %cst_24 {dimension_numbers = #tpu.dot_dimension_numbers<[1], [0], [0], [1], [0, 0, 1, 1], [], []>} : vector<8x128xbf16>, vector<128x256xbf16>, vector<8x256xf32> -> vector<8x256xf32>
      %40 = arith.mulf %39, %39 : vector<8x256xf32>
      %cst_25 = arith.constant dense<0.000000e+00> : vector<8xf32>
      %41 = vector.multi_reduction <add>, %40, %cst_25 [1] : vector<8x256xf32> to vector<8xf32>
      %42 = vector.shape_cast %41 : vector<8xf32> to vector<8x1xf32>
      %cst_26 = arith.constant 2.560000e+02 : f32
      %43 = vector.broadcast %cst_26 : f32 to vector<8x1xf32>
      %44 = arith.divf %42, %43 : vector<8x1xf32>
      %cst_27 = arith.constant 9.99999997E-7 : f32
      %45 = vector.broadcast %cst_27 : f32 to vector<8x1xf32>
      %46 = arith.addf %44, %45 : vector<8x1xf32>
      %47 = math.rsqrt %46 : vector<8x1xf32>
      %48 = vector.broadcast %47 : vector<8x1xf32> to vector<8x256xf32>
      %49 = arith.mulf %39, %48 : vector<8x256xf32>
      %c0_28 = arith.constant 0 : index
      %c0_29 = arith.constant 0 : index
      %50 = vector.load %arg5[%c0_28, %c0_29] : memref<1x256xf32, #tpu.memory_space<vmem>>, vector<1x256xf32>
      %51 = vector.broadcast %50 : vector<1x256xf32> to vector<8x256xf32>
      %52 = arith.mulf %51, %49 : vector<8x256xf32>
      %c0_30 = arith.constant 0 : index
      %c0_31 = arith.constant 0 : index
      %53 = vector.load %arg6[%c0_30, %c0_31] : memref<8x256xf32, #tpu.memory_space<vmem>>, vector<8x256xf32>
      tpu.vector_store %arg6[%c0_30, %c0_31], %52 {strides = array<i32>} : memref<8x256xf32, #tpu.memory_space<vmem>>, vector<8x256xf32>,
    } else {
    }
    return
  }
  func.func @transform_0(%arg0: i32, %arg1: i32) -> (i32, i32) {
    %c0_i32 = arith.constant 0 : i32
    return %arg0, %arg1 : i32, i32
  }
  func.func @transform_1(%arg0: i32, %arg1: i32) -> (i32, i32) {
    %c0_i32 = arith.constant 0 : i32
    %c0_i32_0 = arith.constant 0 : i32
    return %arg1, %c0_i32 : i32, i32
  }
  func.func @transform_2(%arg0: i32, %arg1: i32) -> (i32, i32) {
    %c0_i32 = arith.constant 0 : i32
    %c0_i32_0 = arith.constant 0 : i32
    %c0_i32_1 = arith.constant 0 : i32
    return %c0_i32, %c0_i32_0 : i32, i32
  }
  func.func @transform_3(%arg0: i32, %arg1: i32) -> (i32, i32) {
    %c0_i32 = arith.constant 0 : i32
    %c0_i32_0 = arith.constant 0 : i32
    %c0_i32_1 = arith.constant 0 : i32
    return %c0_i32, %c0_i32_0 : i32, i32
  }
  func.func @transform_4(%arg0: i32, %arg1: i32) -> (i32, i32) {
    %c0_i32 = arith.constant 0 : i32
    %c0_i32_0 = arith.constant 0 : i32
    return %arg0, %c0_i32 : i32, i32
  }
}

</mosaic_0001>

<bundles_post_ra>
// kernel: gazelle_projector.1
= control target key start
LH: loop header
LB: loop body
LE: loop exit
PB: predicated region body
PF: predicated region fallthrough
CT: control target
= control target key end

     0   :  { %vm24_vm0 = vcmask 7168   ;;  %v463_v1 = vmov 0   ;;  %v464_v2 = vmov 0.0   ;;  %s600_s0 = inlined_call_operand.vmem [shape: f32[8,128], index: 0, kind: input, shape index: {}]   ;;  %s601_s1 = inlined_call_operand.vmem [shape: bf16[128,256], index: 1, kind: input, shape index: {}]   ;;  %s602_s2 = inlined_call_operand.vmem [shape: bf16[128,256], index: 2, kind: input, shape index: {}]   ;;  %s603_s3 = inlined_call_operand.vmem [shape: f32[1,256], index: 3, kind: input, shape index: {}]   ;;  %s604_s4 = inlined_call_operand.vmem [shape: f32[8,256], index: 4, kind: output, shape index: {}]  }
   0x1   :  { %v26_v0 = vld [vmem:[%s600_s0] sm:$0xff]  ;;  %165 = vmatprep.mubr.bf16.mxu0 %v463_v1  ;;  %25 = vst.msk [vmem:[#allocation3] sm:$0xff] %vm24_vm0, %v464_v2  ;;  %406 = vset.pattern.permute.xlu0 %v463_v1  ;;  %v410_v6 = vld [vmem:[%s601_s1 + $0x14] ss:$8 sps:$4 sm:$0xff]   ;;  %v412_v7 = vld [vmem:[%s601_s1 + $0x10] ss:$8 sps:$4 sm:$0xff]  }
   0x2   :  { %v28_v3 = vmul.f32 %v26_v0, %v26_v0  ;;  %v407_v4 = vld [vmem:[%s601_s1 + $0x4] ss:$8 sps:$4 sm:$0xff]   ;;  %v409_v5 = vld [vmem:[%s601_s1] ss:$8 sps:$4 sm:$0xff]   ;;  %331 = vmatprep.mubr.bf16.mxu1 %v463_v1  ;;  %v416_v10 = vld [vmem:[%s601_s1 + $0x34] ss:$8 sps:$4 sm:$0xff]   ;;  %v34_v20 = vpack.c.bf16 %v26_v0, %v26_v0 }
   0x3   :  { %133 = vmatprep.subr.bf16.mxu0 %v407_v4  ;;  %v413_v8 = vld [vmem:[%s601_s1 + $0x24] ss:$8 sps:$4 sm:$0xff]   ;;  %v415_v9 = vld [vmem:[%s601_s1 + $0x20] ss:$8 sps:$4 sm:$0xff]   ;;  %v418_v11 = vld [vmem:[%s601_s1 + $0x30] ss:$8 sps:$4 sm:$0xff]  }
   0x4   :  { %29 = vadd.xlane.f32.xlu0 %v28_v3  ;;  %134 = vmatpush1.bf16.msra.mxu0 %v409_v5  ;;  %v419_v12 = vld [vmem:[%s601_s1 + $0x44] ss:$8 sps:$4 sm:$0xff]   ;;  %v421_v13 = vld [vmem:[%s601_s1 + $0x40] ss:$8 sps:$4 sm:$0xff]   ;;  %v422_v14 = vld [vmem:[%s601_s1 + $0x54] ss:$8 sps:$4 sm:$0xff]   ;;  %v353_v3 = vlaneseq }
   0x5   :  { %135 = vmatprep.subr.bf16.mxu0 %v410_v6  ;;  %v424_v15 = vld [vmem:[%s601_s1 + $0x50] ss:$8 sps:$4 sm:$0xff]   ;;  %v425_v16 = vld [vmem:[%s601_s1 + $0x64] ss:$8 sps:$4 sm:$0xff]   ;;  %v427_v17 = vld [vmem:[%s601_s1 + $0x60] ss:$8 sps:$4 sm:$0xff]  }
   0x6   :  { %v428_v18 = vld [vmem:[%s601_s1 + $0x74] ss:$8 sps:$4 sm:$0xff]   ;;  %v430_v19 = vld [vmem:[%s601_s1 + $0x70] ss:$8 sps:$4 sm:$0xff]   ;;  %v431_v28 = vld [vmem:[%s602_s2 + $0x4] ss:$8 sps:$4 sm:$0xff]  }
   0x7   :  { %v433_v29 = vld [vmem:[%s602_s2] ss:$8 sps:$4 sm:$0xff]   ;;  %299 = vmatprep.subr.bf16.mxu1 %v431_v28  ;;  %v434_v30 = vld [vmem:[%s602_s2 + $0x14] ss:$8 sps:$4 sm:$0xff]   ;;  %v436_v31 = vld [vmem:[%s602_s2 + $0x10] ss:$8 sps:$4 sm:$0xff]  }
   0x8   :  { %136 = vmatpush1.bf16.msra.mxu0 %v412_v7  ;;  %v27_v21 = vld [vmem:[#allocation3] sm:$0xff]  ;;  %300 = vmatpush1.bf16.msra.mxu1 %v433_v29  ;;  %v440_v34 = vld [vmem:[%s602_s2 + $0x34] ss:$8 sps:$4 sm:$0xff]   ;;  %v442_v35 = vld [vmem:[%s602_s2 + $0x30] ss:$8 sps:$4 sm:$0xff]   ;;  %v354_v5 = vshrl.u32 %v353_v3, 7 }
   0x9   :  { %137 = vmatprep.subr.bf16.mxu0 %v413_v8  ;;  %301 = vmatprep.subr.bf16.mxu1 %v434_v30  ;;  %v437_v32 = vld [vmem:[%s602_s2 + $0x24] ss:$8 sps:$4 sm:$0xff]   ;;  %v439_v33 = vld [vmem:[%s602_s2 + $0x20] ss:$8 sps:$4 sm:$0xff]   ;;  %v446_v38 = vld [vmem:[%s602_s2 + $0x54] ss:$8 sps:$4 sm:$0xff]  }
   0xa   :  { %v443_v36 = vld [vmem:[%s602_s2 + $0x44] ss:$8 sps:$4 sm:$0xff]   ;;  %v445_v37 = vld [vmem:[%s602_s2 + $0x40] ss:$8 sps:$4 sm:$0xff]   ;;  %v448_v39 = vld [vmem:[%s602_s2 + $0x50] ss:$8 sps:$4 sm:$0xff]  }
   0xb   :  { %v449_v40 = vld [vmem:[%s602_s2 + $0x64] ss:$8 sps:$4 sm:$0xff]   ;;  %v451_v41 = vld [vmem:[%s602_s2 + $0x60] ss:$8 sps:$4 sm:$0xff]   ;;  %v452_v42 = vld [vmem:[%s602_s2 + $0x74] ss:$8 sps:$4 sm:$0xff]  }
   0xc   :  { %138 = vmatpush1.bf16.msra.mxu0 %v415_v9  ;;  %302 = vmatpush1.bf16.msra.mxu1 %v436_v31  ;;  %v454_v43 = vld [vmem:[%s602_s2 + $0x70] ss:$8 sps:$4 sm:$0xff]   ;;  %v355_v6 = vsub.s32 0, %v354_v5  ;;  %v359_v7 = vsub.s32 1, %v354_v5  ;;  %v351_v8 = vld [vmem:[%s603_s3] sm:$0x3] }
   0xd   :  { %139 = vmatprep.subr.bf16.mxu0 %v416_v10  ;;  %303 = vmatprep.subr.bf16.mxu1 %v437_v32 }
   0xe   :  { %v356_v9 = vrot.slane %v351_v8, %v355_v6  ;;  %v360_v10 = vrot.slane %v351_v8, %v359_v7 }
  0x10   :  { %140 = vmatpush1.bf16.msra.mxu0 %v418_v11  ;;  %304 = vmatpush1.bf16.msra.mxu1 %v439_v33 }
  0x11   :  { %141 = vmatprep.subr.bf16.mxu0 %v419_v12  ;;  %305 = vmatprep.subr.bf16.mxu1 %v440_v34 }
  0x14   :  { %142 = vmatpush1.bf16.msra.mxu0 %v421_v13  ;;  %306 = vmatpush1.bf16.msra.mxu1 %v442_v35 }
  0x15   :  { %143 = vmatprep.subr.bf16.mxu0 %v422_v14  ;;  %307 = vmatprep.subr.bf16.mxu1 %v443_v36 }
  0x18   :  { %144 = vmatpush1.bf16.msra.mxu0 %v424_v15  ;;  %308 = vmatpush1.bf16.msra.mxu1 %v445_v37 }
  0x19   :  { %145 = vmatprep.subr.bf16.mxu0 %v425_v16  ;;  %309 = vmatprep.subr.bf16.mxu1 %v446_v38 }
  0x1c   :  { %146 = vmatpush1.bf16.msra.mxu0 %v427_v17  ;;  %310 = vmatpush1.bf16.msra.mxu1 %v448_v39 }
  0x1d   :  { %147 = vmatprep.subr.bf16.mxu0 %v428_v18  ;;  %311 = vmatprep.subr.bf16.mxu1 %v449_v40 }
  0x20   :  { %148 = vmatpush1.bf16.msra.mxu0 %v430_v19  ;;  %312 = vmatpush1.bf16.msra.mxu1 %v451_v41 }
  0x21   :  { %313 = vmatprep.subr.bf16.mxu1 %v452_v42 }
  0x23   :  { %166 = vmatmul.mubr.bf16.vlgmr.msra.gmra.mrb[0].mxu0 %v34_v20 }
  0x24   :  { %314 = vmatpush1.bf16.msra.mxu1 %v454_v43 }
  0x91   :  { %v30_v22 = vpop.xlane.xlu0 %29 }
  0x92   :  { %v31_v23 = vadd.f32 %v30_v22, %v27_v21 }
  0x94   :  { %33 = vst.msk [vmem:[#allocation3] sm:$0xff] %vm24_vm0, %v31_v23 }
  0x9b   :  { %v181_v24 = vld [vmem:[#allocation3] sm:$0xff] }
  0x9c   :  { %v182_v25 = vmul.f32 0.0078125, %v181_v24 }
  0x9e   :  { %v183_v26 = vadd.f32 1e-06, %v182_v25 }
  0xa0   :  { %455 = vrsqrt.f32 %v183_v26 }
  0xaa   :  { %v456_v27 = vpop.eup %455 }
  0xab   :  { %189 = vperm.xlu0 %406, %v456_v27  }
  0xf6   :  { %v167_v44 = vpop.f32.mrb[0].mxu0 }
  0xf7   :  { %v169_v45 = vpop.f32.mrb[1].mxu0 }
  0xf8   :  { %v171_v46 = vpop.f32.mrb[2].mxu0 }
  0xf9   :  { %v172_v47 = vpop.f32.mrb[3].mxu0 }
 0x12a   :  { %v190_v48 = vpop.permute.xlu0 %189 }
 0x12b   :  { %v193_v49 = vmul.f32 %v190_v48, %v169_v45  ;;  %v192_v54 = vmul.f32 %v190_v48, %v167_v44 }
 0x12d   :  { %v387_v50 = vmul.f32 -1.442695, %v193_v49 }
 0x12f   :  { %457 = vpow2.f32 %v387_v50 }
 0x139   :  { %v458_v51 = vpop.eup %457 }
 0x13a   :  { %v197_v52 = vadd.f32 1.0, %v458_v51 }
 0x13c   :  { %459 = vrcp.f32 %v197_v52 }
 0x146   :  { %v460_v53 = vpop.eup %459 }
 0x147   :  { %v200_v55 = vmul.f32 %v460_v53, %v193_v49 }
 0x149   :  { %v201_v56 = vmul.f32 %v200_v55, %v192_v54 }
 0x14b   :  { %v202_v57 = vpack.c.bf16 %v201_v56, %v201_v56 }
 0x14d   :  { %332 = vmatmul.mubr.bf16.vlgmr.msra.gmra.mrb[0].mxu1 %v202_v57 }
 0x220   :  { %v333_v58 = vpop.f32.mrb[0].mxu1 }
 0x221   :  { %v340_v59 = vmul.f32 %v333_v58, %v333_v58  ;;  %v335_v60 = vpop.f32.mrb[1].mxu1 }
 0x222   :  { %v341_v61 = vmul.f32 %v335_v60, %v335_v60  ;;  %v337_v62 = vpop.f32.mrb[2].mxu1 }
 0x223   :  { %v338_v63 = vpop.f32.mrb[3].mxu1 }
 0x224   :  { %v342_v0 = vadd.f32 %v341_v61, %v340_v59 }
 0x226   :  { %343 = vadd.xlane.f32.xlu1 %v342_v0 }
 0x2b3   :  { %v344_v1 = vpop.xlane.xlu1 %343 }
 0x2b4   :  { %v346_v2 = vmul.f32 0.00390625, %v344_v1 }
 0x2b6   :  { %v347_v4 = vadd.f32 1e-06, %v346_v2 }
 0x2b8   :  { %461 = vrsqrt.f32 %v347_v4 }
 0x2c2   :  { %v462_v11 = vpop.eup %461 }
 0x2c3   :  { %v349_v12 = vmul.f32 %v462_v11, %v333_v58  ;;  %v350_v13 = vmul.f32 %v462_v11, %v335_v60 }
 0x2c5   :  { %v363_v14 = vmul.f32 %v356_v9, %v349_v12  ;;  %v364_v15 = vmul.f32 %v360_v10, %v350_v13 }
 0x2c7   :  { %365 = vst [vmem:[%s604_s4] sm:$0xff] %v363_v14  ;;  %366 = vst [vmem:[%s604_s4 + $0x8] sm:$0xff] %v364_v15 }

</bundles_post_ra>
